<compile_context>
chip_gen: v7x
topology: tpu7x:2x2x1
jax: 0.10.0
libtpu: 0.0.40
codegen_flags: <defaults>
</compile_context>

<pallas_src>
import jax
import jax.numpy as jnp
from jax.experimental import pallas as pl
from jax.experimental.pallas import tpu as pltpu

F32 = jnp.float32


def _round_up(x, m):
    return (x + m - 1) // m * m


# ----------------------------------------------------------------------------
# kernel: whole Time2Vec forward on one row-block
# ----------------------------------------------------------------------------
def _time2vec_kernel(t_ref, omega_ref, w_cos_ref, w_sin_ref, b_ref, o_ref):
    # t: [rows, 1], omega: [1, K]  ->  phase: [rows, K]   (VPU broadcast-mul)
    phase = t_ref[...] * omega_ref[...]
    # cos/sin go to the EUP; the two dots accumulate on the MXU — no lane-axis
    # concatenate / relayout of [rows, 2K] is ever materialized.
    y = jnp.dot(jnp.cos(phase), w_cos_ref[...], preferred_element_type=F32)
    y = y + jnp.dot(jnp.sin(phase), w_sin_ref[...], preferred_element_type=F32)
    o_ref[...] = y + b_ref[...]


# ----------------------------------------------------------------------------
# wrapper
# ----------------------------------------------------------------------------
def time2vec(t, omega, w, b, *, block_rows=256):
    """Time2Vec forward.

    t:     [N]        timestamps
    omega: [K]        frequency parameter
    w:     [2K, K]    linear weight in [in, out] layout (== torch weight.T)
    b:     [K]        linear bias
    returns [N, K] float32
    """
    N = t.shape[0]
    K = omega.shape[0]

    # pad rows to a sublane multiple (8) so stores are never partial-sublane
    n_pad = max(8, _round_up(N, 8))

    t2 = jnp.zeros((n_pad, 1), F32).at[:N, 0].set(t.astype(F32))
    omega2 = omega.reshape(1, K).astype(F32)
    w = w.astype(F32)
    w_cos = w[:K]            # [K, K]  (static slice, no runtime cost)
    w_sin = w[K:]            # [K, K]
    b2 = b.reshape(1, K).astype(F32)

    if n_pad <= block_rows:
        # small input: single fused block, no grid, full-array VMEM residency
        vmem = pl.BlockSpec(memory_space=pltpu.MemorySpace.VMEM)
        out = pl.pallas_call(
            _time2vec_kernel,
            in_specs=[vmem, vmem, vmem, vmem, vmem],
            out_specs=vmem,
            out_shape=jax.ShapeDtypeStruct((n_pad, K), F32),
        )(t2, omega2, w_cos, w_sin, b2)
    else:
        # large input: stream rows in lane-dense [block_rows, K] tiles; the
        # tiny [K, K] weights stay resident across the grid.
        n_pad = _round_up(n_pad, block_rows)
        t2 = jnp.zeros((n_pad, 1), F32).at[:N, 0].set(t.astype(F32))
        grid = (n_pad // block_rows,)
        out = pl.pallas_call(
            _time2vec_kernel,
            grid=grid,
            in_specs=[
                pl.BlockSpec((block_rows, 1), lambda i: (i, 0)),
                pl.BlockSpec((1, K), lambda i: (0, 0)),
                pl.BlockSpec((K, K), lambda i: (0, 0)),
                pl.BlockSpec((K, K), lambda i: (0, 0)),
                pl.BlockSpec((1, K), lambda i: (0, 0)),
            ],
            out_specs=pl.BlockSpec((block_rows, K), lambda i: (i, 0)),
            out_shape=jax.ShapeDtypeStruct((n_pad, K), F32),
            compiler_params=pltpu.CompilerParams(
                dimension_semantics=("parallel",)),
        )(t2, omega2, w_cos, w_sin, b2)

    return out[:N]


# ----------------------------------------------------------------------------
# pure-JAX reference (mirrors the torch module exactly)
# ----------------------------------------------------------------------------
def time2vec_ref(t, omega, w, b):
    phase = t.astype(F32)[:, None] * omega[None, :]
    t2v = jnp.concatenate([jnp.cos(phase), jnp.sin(phase)], axis=-1)
    return t2v @ w + b[None, :]


# ----------------------------------------------------------------------------
if __name__ == "__main__":
    dim = 32        # Time2Vec hidden dim K
    seq = 8         # number of timestamps

    key = jax.random.PRNGKey(0)
    k_t, k_o, k_w, k_b, k_t_big = jax.random.split(key, 5)

    t = jax.random.uniform(k_t, (seq,), F32) * 10.0
    omega = jax.random.normal(k_o, (dim,), F32)
    w = jax.random.normal(k_w, (2 * dim, dim), F32) / jnp.sqrt(jnp.float32(2 * dim))
    b = jax.random.normal(k_b, (dim,), F32) * 0.01

    # small path: single fused no-grid kernel
    y = jax.block_until_ready(time2vec(t, omega, w, b))
    y_ref = time2vec_ref(t, omega, w, b)
    assert y.shape == (seq, dim), y.shape
    assert bool(jnp.all(jnp.isfinite(y)))
    assert bool(jnp.allclose(y, y_ref, rtol=1e-4, atol=1e-4)), "small-path mismatch"

    # large path: row-tiled parallel grid
    t_big = jax.random.uniform(k_t_big, (1024,), F32) * 10.0
    y_big = jax.block_until_ready(time2vec(t_big, omega, w, b, block_rows=256))
    y_big_ref = time2vec_ref(t_big, omega, w, b)
    assert y_big.shape == (1024, dim), y_big.shape
    assert bool(jnp.allclose(y_big, y_big_ref, rtol=1e-4, atol=1e-4)), "tiled-path mismatch"

    print("KERNEL_OK")
</pallas_src>

<mosaic_0001>
module attributes {stable_mosaic.version = 11 : i64} {
  func.func @_time2vec_kernel(%arg0: memref<8x1xf32, #tpu.memory_space<vmem>>, %arg1: memref<1x32xf32, #tpu.memory_space<vmem>>, %arg2: memref<32x32xf32, #tpu.memory_space<vmem>>, %arg3: memref<32x32xf32, #tpu.memory_space<vmem>>, %arg4: memref<1x32xf32, #tpu.memory_space<vmem>>, %arg5: memref<8x32xf32, #tpu.memory_space<vmem>>) attributes {dimension_semantics = [], scalar_prefetch = 0 : i64, scratch_operands = 0 : i64, tpu.core_type = #tpu.core_type<tc>} {
    %c0 = arith.constant 0 : index
    %c0_0 = arith.constant 0 : index
    %0 = vector.load %arg0[%c0, %c0_0] : memref<8x1xf32, #tpu.memory_space<vmem>>, vector<8x1xf32>
    %c0_1 = arith.constant 0 : index
    %c0_2 = arith.constant 0 : index
    %1 = vector.load %arg1[%c0_1, %c0_2] : memref<1x32xf32, #tpu.memory_space<vmem>>, vector<1x32xf32>
    %2 = vector.broadcast %0 : vector<8x1xf32> to vector<8x32xf32>
    %3 = vector.broadcast %1 : vector<1x32xf32> to vector<8x32xf32>
    %4 = arith.mulf %2, %3 : vector<8x32xf32>
    %5 = math.cos %4 : vector<8x32xf32>
    %c0_3 = arith.constant 0 : index
    %c0_4 = arith.constant 0 : index
    %6 = vector.load %arg2[%c0_3, %c0_4] : memref<32x32xf32, #tpu.memory_space<vmem>>, vector<32x32xf32>
    %cst = arith.constant dense<0.000000e+00> : vector<8x32xf32>
    %7 = tpu.matmul %5, %6, %cst {dimension_numbers = #tpu.dot_dimension_numbers<[1], [0], [0], [1], [0, 0, 1, 1], [], []>} : vector<8x32xf32>, vector<32x32xf32>, vector<8x32xf32> -> vector<8x32xf32>
    %8 = math.sin %4 : vector<8x32xf32>
    %c0_5 = arith.constant 0 : index
    %c0_6 = arith.constant 0 : index
    %9 = vector.load %arg3[%c0_5, %c0_6] : memref<32x32xf32, #tpu.memory_space<vmem>>, vector<32x32xf32>
    %cst_7 = arith.constant dense<0.000000e+00> : vector<8x32xf32>
    %10 = tpu.matmul %8, %9, %cst_7 {dimension_numbers = #tpu.dot_dimension_numbers<[1], [0], [0], [1], [0, 0, 1, 1], [], []>} : vector<8x32xf32>, vector<32x32xf32>, vector<8x32xf32> -> vector<8x32xf32>
    %11 = arith.addf %7, %10 : vector<8x32xf32>
    %c0_8 = arith.constant 0 : index
    %c0_9 = arith.constant 0 : index
    %12 = vector.load %arg4[%c0_8, %c0_9] : memref<1x32xf32, #tpu.memory_space<vmem>>, vector<1x32xf32>
    %13 = vector.broadcast %12 : vector<1x32xf32> to vector<8x32xf32>
    %14 = arith.addf %11, %13 : vector<8x32xf32>
    %c0_10 = arith.constant 0 : index
    %c0_11 = arith.constant 0 : index
    %15 = vector.load %arg5[%c0_10, %c0_11] : memref<8x32xf32, #tpu.memory_space<vmem>>, vector<8x32xf32>
    tpu.vector_store %arg5[%c0_10, %c0_11], %14 {strides = array<i32>} : memref<8x32xf32, #tpu.memory_space<vmem>>, vector<8x32xf32>,
    return
  }
}

</mosaic_0001>

<bundles_post_ra>
// kernel: tpu_custom_call.1
= control target key start
LH: loop header
LB: loop body
LE: loop exit
PB: predicated region body
PF: predicated region fallthrough
CT: control target
= control target key end

     0   :  { %10 = vsyncpa [#allocation3], 0  ;;  %s716_s0 = inlined_call_operand.vmem [shape: f32[8,1], index: 0, kind: input, shape index: {}]   ;;  %s717_s1 = inlined_call_operand.vmem [shape: f32[1,32], index: 1, kind: input, shape index: {}]   ;;  %s718_s2 = inlined_call_operand.hbm [shape: f32[32,32], index: 2, kind: input, shape index: {}]   ;;  %s719_s3 = inlined_call_operand.hbm [shape: f32[32,32], index: 3, kind: input, shape index: {}]   ;;  %s720_s4 = inlined_call_operand.vmem [shape: f32[1,32], index: 4, kind: input, shape index: {}]   ;;  %s721_s5 = inlined_call_operand.hbm [shape: f32[8,32], index: 5, kind: output, shape index: {}]  }
   0x1   :  { %11 = vsyncpa [#allocation6], 0 }
   0x2   :  { %12 = vsyncpa [#allocation4], 0  ;;  %s602_s18 = smov [#allocation2]   ;;  %s530_s22 = scalar_lea.hbm %s718_s2, 512 }
   0x3   :  { %s22_s19 = sshll.u32 %s602_s18, 4  ;;  %p531_p0 = scmp.ne.s32.totalorder %s718_s2, %s530_s22  ;;  %s23_s19 = int_to_ptr.vmem [resolvable:$true] %s22_s19 }
   0x4   :  { %p534_p1 = scmp.lt.u32.totalorder %s530_s22, %s718_s2 }
   0x6   :  { %p536_p2 = pnand %p534_p1, %p531_p0 }
   0x8   :  { %539 = shalt.err (!%p536_p2)
}
   0x9   :  { %s540_s27 = scalar_lea.vmem %s23_s19, 512  ;;  %p545_p4 = scmp.lt.s32.totalorder %s23_s19, %s23_s19 }
   0xa   :  { %p541_p3 = scmp.ne.s32.totalorder %s23_s19, %s540_s27  ;;  %p546_p5 = scmp.lt.s32.totalorder %s540_s27, %s540_s27 }
   0xc   :  { %p547_p6 = por %p546_p5, %p545_p4 }
   0xe   :  { %p548_p7 = pnand %p547_p6, %p541_p3 }
  0x10   :  { %551 = shalt.err (!%p548_p7)
}
  0x11   :  { %s603_s28 = smov 128   ;;  %s604_s29 = smov 8  }
  0x12   :  { %28 = dma.hbm_to_vmem [thread:$0]  %s718_s2, 512, %s23_s19, [#allocation3], %s603_s28, %s603_s28, %s604_s29  }
  0x13   :  { %s605_s7 = smov [#allocation5]   ;;  %s552_s11 = scalar_lea.hbm %s719_s3, 512 }
  0x14   :  { %s34_s8 = sshll.u32 %s605_s7, 4  ;;  %p553_p8 = scmp.ne.s32.totalorder %s719_s3, %s552_s11  ;;  %s35_s8 = int_to_ptr.vmem [resolvable:$true] %s34_s8 }
  0x15   :  { %p556_p9 = scmp.lt.u32.totalorder %s552_s11, %s719_s3 }
  0x17   :  { %p558_p10 = pnand %p556_p9, %p553_p8 }
  0x19   :  { %561 = shalt.err (!%p558_p10)
}
  0x1a   :  { %s562_s16 = scalar_lea.vmem %s35_s8, 512  ;;  %p567_p12 = scmp.lt.s32.totalorder %s35_s8, %s35_s8 }
  0x1b   :  { %p563_p11 = scmp.ne.s32.totalorder %s35_s8, %s562_s16  ;;  %p568_p13 = scmp.lt.s32.totalorder %s562_s16, %s562_s16 }
  0x1d   :  { %p569_p0 = por %p568_p13, %p567_p12 }
  0x1f   :  { %p570_p1 = pnand %p569_p0, %p563_p11 }
  0x21   :  { %573 = shalt.err (!%p570_p1)
}
  0x22   :  { %40 = dma.hbm_to_vmem [thread:$0]  %s719_s3, 512, %s35_s8, [#allocation6], %s603_s28, %s603_s28, %s604_s29  }
  0x23   :  { %596 = dma.done.wait [#allocation3], 512  }
  0x24   :  { %597 = vsyncadd [#allocation3], 4294966784 }
  0x25   :  { %598 = dma.done.wait [#allocation6], 512  }
  0x26   :  { %599 = vsyncadd [#allocation6], 4294966784  ;;  %v606_v0 = vmov 0   ;;  %v49_v1 = vld [vmem:[%s716_s0] sm:$0xff]  ;;  %v275_v3 = vld [vmem:[#allocation5 + $0x8] sm:$0xff]  ;;  %v607_v5 = vmov 0.0|0.0  }
  0x27   :  { %525 = vset.pattern.permute.xlu0 %v606_v0  ;;  %v274_v2 = vld [vmem:[#allocation5] sm:$0xff]  ;;  %494 = vmatprep.subr.bf16.mxu0 %v607_v5  ;;  %v167_v7 = vld [vmem:[#allocation2 + $0x8] sm:$0xff]  ;;  %v276_v8 = vld [vmem:[#allocation5 + $0x10] sm:$0xff]  ;;  %vm608_vm0 = vmmov 0   ;;  %v609_v13 = vmov 0.0   ;;  %vm278_vm11 = vcmask 261120  }
  0x28   :  { %53 = vperm.xlu0 %525, %v49_v1   ;;  %v166_v4 = vld [vmem:[#allocation2] sm:$0xff]  ;;  %500 = vmatprep.subr.bf16.mxu1 %v607_v5  ;;  %v495_v6 = vpack.c.bf16 %v275_v3, %v274_v2  ;;  %v277_v9 = vld [vmem:[#allocation5 + $0x18] sm:$0xff]  ;;  %v168_v11 = vld [vmem:[#allocation2 + $0x10] sm:$0xff]  ;;  %v610_v29 = vmov 683565275   ;;  %s616_s21 = smov [#allocation7]  }
  0x29   :  { %v501_v10 = vpack.c.bf16 %v167_v7, %v166_v4  ;;  %v169_v12 = vld [vmem:[#allocation2 + $0x18] sm:$0xff]  ;;  %480 = vmatprep.mubr.msk.f32.mxu0 %vm608_vm0, %v609_v13  ;;  %491 = vmatprep.mubr.msk.f32.mxu1 %vm608_vm0, %v609_v13  ;;  %v498_v14 = vpack.c.bf16 %v277_v9, %v276_v8  ;;  %v450_v16 = vld [vmem:[%s717_s1] ss:$0 sm:$0xff]  ;;  %v611_v31 = vmov 2475754826   ;;  %s440_s22 = sshll.u32 %s616_s21, 4  ;;  %s441_s22 = int_to_ptr.vmem [resolvable:$true] %s440_s22 }
  0x2a   :  { %496 = vmatpush3.bf16.msra.mxu0 %v495_v6  ;;  %v504_v15 = vpack.c.bf16 %v169_v12, %v168_v11  ;;  %v612_v34 = vmov 2131351028   ;;  %v613_v37 = vmov 2102212464   ;;  %v614_v40 = vmov 920167782   ;;  %p579_p3 = scmp.lt.s32.totalorder %s441_s22, %s441_s22 }
  0x2b   :  { %502 = vmatpush3.bf16.msra.mxu1 %v501_v10  ;;  %497 = vmatprep.subr.bf16.mxu0 %v607_v5  ;;  %v615_v43 = vmov 1326507024   ;;  %s574_s23 = scalar_lea.vmem %s441_s22, 128 }
  0x2c   :  { %503 = vmatprep.subr.bf16.mxu1 %v607_v5  ;;  %p575_p2 = scmp.ne.s32.totalorder %s441_s22, %s574_s23  ;;  %p580_p4 = scmp.lt.s32.totalorder %s574_s23, %s574_s23 }
  0x2e   :  { %499 = vmatpush3.bf16.msra.mxu0 %v498_v14  ;;  %p581_p5 = por %p580_p4, %p579_p3 }
  0x2f   :  { %505 = vmatpush3.bf16.msra.mxu1 %v504_v15 }
  0x30   :  { %p582_p6 = pnand %p581_p5, %p575_p2 }
  0xa7   :  { %v54_v17 = vpop.permute.xlu0 %53 }
  0xa8   :  { %v677_v18 = vmul.f32 %v450_v16, %v54_v17 }
  0xaa   :  { %v66_v19 = vand.u32 2139095040, %v677_v18  ;;  %v63_v23 = vand.u32 2147483647, %v677_v18  ;;  %vm65_vm8 = vcmp.lt.s32.totalorder %v677_v18, 0 }
  0xac   :  { %v67_v20 = vshrl.u32 %v66_v19, 23  ;;  %v70_v26 = vand.u32 8388607, %v63_v23  ;;  %vm64_vm9 = vcmp.le.f32.partialorder %v63_v23, 0.7853982 }
  0xae   :  { %v451_v21 = vadd.s32 4294967169, %v67_v20  ;;  %v71_v45 = vor.u32 8388608, %v70_v26 }
  0xb0   :  { %v73_v22 = vadd.s32 1, %v451_v21  ;;  %v111_v59 = vshll.u32 %v71_v45, 8 }
  0xb2   :  { %vm74_vm1 = vcmp.gt.s32.totalorder %v73_v22, 0 }
  0xb3   :  { %v75_v24 = vsel %vm74_vm1, %v73_v22, 0  ;;  %vm155_vm1 = vweird.f32 %v677_v18 }
  0xb4   :  { %v77_v25 = vand.u32 31, %v75_v24  ;;  %v76_v28 = vshrl.u32 %v75_v24, 5 }
  0xb6   :  { %v78_v27 = vsub.s32 32, %v77_v25  ;;  %v80_v30 = vshll.u32 %v610_v29, %v77_v25  ;;  %v83_v32 = vshll.u32 %v611_v31, %v77_v25  ;;  %v86_v36 = vshll.u32 %v612_v34, %v77_v25 }
  0xb7   :  { %v89_v39 = vshll.u32 %v613_v37, %v77_v25  ;;  %v92_v42 = vshll.u32 %v614_v40, %v77_v25  ;;  %vm95_vm2 = vcmp.lt.s32.totalorder %v76_v28, 1  ;;  %vm98_vm3 = vcmp.lt.s32.totalorder %v76_v28, 4 }
  0xb8   :  { %v81_v33 = vshrl.u32 %v611_v31, %v78_v27  ;;  %v84_v35 = vshrl.u32 %v612_v34, %v78_v27  ;;  %v87_v38 = vshrl.u32 %v613_v37, %v78_v27  ;;  %v90_v41 = vshrl.u32 %v614_v40, %v78_v27 }
  0xb9   :  { %v93_v44 = vshrl.u32 %v615_v43, %v78_v27  ;;  %v79_v54 = vshrl.u32 %v610_v29, %v78_v27  ;;  %vm97_vm4 = vcmp.lt.s32.totalorder %v76_v28, 3  ;;  %vm96_vm5 = vcmp.lt.s32.totalorder %v76_v28, 2 }
  0xba   :  { %v82_v46 = vor.u32 %v81_v33, %v80_v30  ;;  %v85_v47 = vor.u32 %v84_v35, %v83_v32  ;;  %v88_v48 = vor.u32 %v87_v38, %v86_v36  ;;  %v91_v49 = vor.u32 %v90_v41, %v89_v39 }
  0xbb   :  { %v94_v50 = vor.u32 %v93_v44, %v92_v42 }
  0xbc   :  { %v100_v51 = vsel %vm98_vm3, %v88_v48, 2102212464  ;;  %v103_v52 = vsel %vm95_vm2, %v82_v46, %v85_v47  ;;  %v107_v53 = vsel %vm95_vm2, %v85_v47, %v88_v48  ;;  %v104_v55 = vsel %vm98_vm3, %v91_v49, 920167782 }
  0xbd   :  { %v108_v56 = vsel %vm98_vm3, %v94_v50, 1326507024  ;;  %v105_v57 = vsel %vm97_vm4, %v88_v48, %v104_v55  ;;  %v99_v60 = vsel %vm95_vm2, %v79_v54, %v82_v46  ;;  %v101_v61 = vsel %vm97_vm4, %v85_v47, %v100_v51  ;;  %v461_v54 = vld [vmem:[%s720_s4] ss:$0 sm:$0xff] }
  0xbe   :  { %v109_v58 = vsel %vm97_vm4, %v91_v49, %v108_v56  ;;  %v106_v62 = vsel %vm96_vm5, %v103_v52, %v105_v57  ;;  %v102_v4 = vsel %vm96_vm5, %v99_v60, %v101_v61 }
  0xbf   :  { %v110_v63 = vsel %vm96_vm5, %v107_v53, %v109_v58  ;;  %v686_v2 = vmul.u32.u64.low %v111_v59, %v106_v62  ;;  %v687_v3 = vmul.u32.u64.high %v111_v59, %v106_v62, %v686_v2  ;;  %v118_v6 = vmul.u32 %v111_v59, %v102_v4 }
  0xc0   :  { %v683_v0 = vmul.u32.u64.low %v111_v59, %v110_v63  ;;  %v684_v1 = vmul.u32.u64.high %v111_v59, %v110_v63, %v683_v0 }
  0xc1   :  { %v121_v5 = vadd.s32 1, %v687_v3 }
  0xc2   :  { %vm120_vm6 = vc.u32 %v684_v1, %v686_v2  ;;  %v119_v19 = vadd.s32 %v686_v2, %v684_v1 }
  0xc3   :  { %v122_v7 = vsel %vm120_vm6, %v121_v5, %v687_v3 }
  0xc4   :  { %v123_v8 = vadd.s32 %v122_v7, %v118_v6 }
  0xc6   :  { %v124_v9 = vadd.s32 536870912, %v123_v8 }
  0xc8   :  { %v125_v10 = vshrl.u32 %v124_v9, 30 }
  0xca   :  { %v126_v11 = vshll.u32 %v125_v10, 30  ;;  %v149_v32 = vsub.s32 4, %v125_v10 }
  0xcc   :  { %v127_v12 = vsub.s32 %v123_v8, %v126_v11  ;;  %v150_v35 = vsel %vm65_vm8, %v149_v32, %v125_v10 }
  0xcd   :  { %v152_v37 = vsel %vm64_vm9, 0, %v150_v35 }
  0xce   :  { %v129_v13 = vsub.s32 0, %v127_v12  ;;  %v263_v38 = vadd.s32 3, %v152_v37  ;;  %v156_v40 = vand.u32 3, %v152_v37 }
  0xd0   :  { %v452_v14 = vmin.u32 %v129_v13, %v127_v12  ;;  %v264_v39 = vand.u32 3, %v263_v38  ;;  %vm161_vm12 = vcmp.eq.s32.totalorder %v156_v40, 2  ;;  %vm158_vm14 = vcmp.eq.s32.totalorder %v156_v40, 0 }
  0xd1   :  { %vm157_vm0 = vcmp.lt.s32.totalorder %v156_v40, 2 }
  0xd2   :  { %v131_v15 = vclz %v452_v14  ;;  %vm269_vm10 = vcmp.eq.s32.totalorder %v264_v39, 2  ;;  %vm266_vm13 = vcmp.eq.s32.totalorder %v264_v39, 0  ;;  %vm265_vm15 = vcmp.lt.s32.totalorder %v264_v39, 2 }
  0xd4   :  { %v453_v16 = vadd.s32 4294967294, %v131_v15 }
  0xd6   :  { %vm454_vm7 = vcmp.lt.s32.totalorder %v453_v16, 0 }
  0xd7   :  { %v134_v17 = vsel %vm454_vm7, 0, %v453_v16 }
  0xd8   :  { %v135_v20 = vsub.s32 32, %v134_v17  ;;  %v139_v21 = vsub.s32 4294967266, %v134_v17  ;;  %v136_v22 = vshll.u32 %v127_v12, %v134_v17 }
  0xda   :  { %v137_v24 = vshrl.u32 %v119_v19, %v135_v20  ;;  %v140_v25 = vadd.s32 127, %v139_v21 }
  0xdc   :  { %v138_v26 = vor.u32 %v137_v24, %v136_v22  ;;  %v141_v27 = vshll.u32 %v140_v25, 23 }
  0xde   :  { %v142_v28 = vor.u32 4788187, %v141_v27  ;;  %v145_v30 = vcvt.s32.f32 %v138_v26 }
  0xe0   :  { %v143_v29 = vand.u32 2147483647, %v142_v28 }
  0xe2   :  { %v146_v31 = vmul.f32 %v145_v30, %v143_v29 }
  0xe4   :  { %v147_v33 = vxor.u32 2147483648, %v146_v31 }
  0xe6   :  { %v148_v34 = vsel %vm65_vm8, %v147_v33, %v146_v31 }
  0xe7   :  { %v151_v36 = vsel %vm64_vm9, %v677_v18, %v148_v34 }
  0xe8   :  { %526 = vcosq.f32 %v151_v36 }
  0xe9   :  { %528 = vsinq.f32 %v151_v36 }
  0xf2   :  { %v527_v41 = vpop.eup %526 }
  0xf3   :  { %v529_v42 = vpop.eup %528  ;;  %v162_v43 = vxor.u32 2147483648, %v527_v41 }
  0xf4   :  { %v159_v44 = vxor.u32 2147483648, %v529_v42 }
  0xf5   :  { %v271_v45 = vsel %vm269_vm10, %v162_v43, %v529_v42  ;;  %v163_v23 = vsel %vm161_vm12, %v162_v43, %v529_v42 }
  0xf6   :  { %v268_v46 = vsel %vm266_vm13, %v527_v41, %v159_v44  ;;  %v160_v47 = vsel %vm158_vm14, %v527_v41, %v159_v44 }
  0xf7   :  { %v272_v48 = vsel %vm265_vm15, %v268_v46, %v271_v45  ;;  %v164_v49 = vsel %vm157_vm0, %v160_v47, %v163_v23 }
  0xf8   :  { %v273_v50 = vsel %vm155_vm1, nan, %v272_v48  ;;  %v165_v51 = vsel %vm155_vm1, nan, %v164_v49 }
  0xf9   :  { %481 = vmatmul.mubr.msk.f32.vlgmr.msra.gmra.mrb[0].mxu0 %vm278_vm11, %v273_v50  ;;  %492 = vmatmul.mubr.msk.f32.vlgmr.msra.gmra.mrb[0].mxu1 %vm278_vm11, %v165_v51 }
 0x1cc   :  { %v348_v52 = vpop.f32.mrb[0].mxu0  ;;  %v421_v53 = vpop.f32.mrb[0].mxu1 }
 0x1cd   :  { %v422_v55 = vadd.f32 %v421_v53, %v348_v52  ;;  %v482_v56 = vpop.f32.mrb[1].mxu0  ;;  %v493_v57 = vpop.f32.mrb[1].mxu1 }
 0x1cf   :  { %v432_v18 = vadd.f32 %v461_v54, %v422_v55 }
 0x1d1   :  { %433 = vst.msk [vmem:[#allocation7] sm:$0xff] %vm278_vm11, %v432_v18 }
 0x1d2   :  { %585 = shalt.err (!%p582_p6)
}
 0x1d3   :  { %s586_s4 = scalar_lea.hbm %s721_s5, 128 }
 0x1d4   :  { %p587_p7 = scmp.ne.s32.totalorder %s721_s5, %s586_s4  ;;  %p590_p8 = scmp.lt.u32.totalorder %s586_s4, %s721_s5 }
 0x1d6   :  { %p592_p9 = pnand %p590_p8, %p587_p7 }
 0x1d8   :  { %595 = shalt.err (!%p592_p9)
}
 0x1d9   :  { %443 = dma.vmem_to_hbm [thread:$0]  %s441_s22, 128, %s721_s5, [#allocation4]  }
 0x1da   :  { %600 = dma.done.wait [#allocation4], 128  }
 0x1db   :  { %601 = vsyncadd [#allocation4], 4294967168 }
 0x1dc   :  { %447 = vsyncpa [#allocation3], 1 }
 0x1dd   :  { %448 = vsyncpa [#allocation6], 1 }
 0x1de   :  { %449 = vsyncpa [#allocation4], 1 }

</bundles_post_ra>
